<compile_context>
chip_gen: v6e
topology: v6e:2x2x1
jax: 0.10.0
libtpu: 0.0.40
codegen_flags: <defaults>
</compile_context>

<pallas_src>
import math
from functools import partial

import jax
import jax.numpy as jnp
from jax import lax
from jax.experimental import pallas as pl
from jax.experimental.pallas import tpu as pltpu


def _attention_layer_kernel(q_ref, k_ref, v_ref,
                            wqt_ref, bqt_ref, wkt_ref, bkt_ref,
                            wvt_ref, bvt_ref, wo_ref, bo_ref,
                            o_ref,
                            q_scratch, m_scratch, l_scratch, acc_scratch,
                            *, n_heads, d_qk, d_v):
    """Grid = (batch, S-tiles). One batch element per step; online softmax over S.

    q_ref    : (1, L,  d_model)  -- revisited (same block) across the S axis
    k_ref    : (1, Ts, d_model)   v_ref : (1, Ts, d_model)
    wqt/wkt  : (H*d_qk, d_model) (wqt/bqt have 1/sqrt(d_qk) folded in)
    wvt      : (H*d_v,  d_model)
    bqt/bkt  : (H*d_qk, 1)        bvt   : (H*d_v, 1)
    wo_ref   : (H, d_v, d_model)  bo_ref: (1, d_model)
    o_ref    : (1, L, d_model)   -- written once, at the last S step
    scratch  : q (H, L, d_qk) [MXU dtype], m/l (H, L, 1) f32, acc (H, L, d_v) f32
    """
    H = n_heads
    s_idx = pl.program_id(1)
    dtype = q_ref.dtype                        # MXU operand dtype (bf16 in production)

    def project_t(w_ref, b_ref, x):
        # One wide 2-D matmul contracting the full d_model axis ("NT" form:
        # no activation transpose needed). Output is (H*d, rows).
        y = lax.dot_general(w_ref[...], x, (((1,), (1,)), ((), ())),
                            preferred_element_type=jnp.float32)
        return y + b_ref[...]

    @pl.when(s_idx == 0)
    def _init():
        # Q projection once per batch block (softmax scale already folded in).
        q2t = project_t(wqt_ref, bqt_ref, q_ref[0])              # (H*d_qk, L) f32
        L = q2t.shape[-1]
        qh = q2t.reshape(H, d_qk, L)                             # tile-aligned head split
        q_scratch[...] = jnp.swapaxes(qh, 1, 2).astype(dtype)    # (H, L, d_qk) minor swap
        m_scratch[...] = jnp.full_like(m_scratch, -jnp.inf)
        l_scratch[...] = jnp.zeros_like(l_scratch)
        acc_scratch[...] = jnp.zeros_like(acc_scratch)

    # Per-S-tile K/V projections: single wide 2-D matmuls; the head split is a
    # leading-dim reshape of the (H*d, Ts) result (no lane relayout).
    k2t = project_t(wkt_ref, bkt_ref, k_ref[0])                  # (H*d_qk, Ts) f32
    v2t = project_t(wvt_ref, bvt_ref, v_ref[0])                  # (H*d_v,  Ts) f32
    Ts = k2t.shape[-1]
    kh = k2t.reshape(H, d_qk, Ts).astype(dtype)                  # (H, d_qk, Ts)
    vh = v2t.reshape(H, d_v, Ts).astype(dtype)                   # (H, d_v,  Ts)
    qh = q_scratch[...]                                          # (H, L, d_qk)

    # scores[h, l, s] = sum_d qh[h,l,d] * kh[h,d,s]  (K consumed pre-transposed)
    scores = lax.dot_general(qh, kh, (((2,), (1,)), ((0,), (0,))),
                             preferred_element_type=jnp.float32)  # (H, L, Ts) f32

    # Online (flash) softmax update, f32 math.
    m_prev = m_scratch[...]
    m_new = jnp.maximum(m_prev, jnp.max(scores, axis=-1, keepdims=True))
    alpha = jnp.exp(m_prev - m_new)
    p = jnp.exp(scores - m_new)
    l_scratch[...] = alpha * l_scratch[...] + jnp.sum(p, axis=-1, keepdims=True)
    # pv[h, l, dv] = sum_s p[h,l,s] * vh[h,dv,s]
    pv = lax.dot_general(p.astype(dtype), vh, (((2,), (2,)), ((0,), (0,))),
                         preferred_element_type=jnp.float32)      # (H, L, d_v) f32
    acc_scratch[...] = alpha * acc_scratch[...] + pv
    m_scratch[...] = m_new

    @pl.when(s_idx == pl.num_programs(1) - 1)
    def _finalize():
        inv_l = pl.reciprocal(l_scratch[...], approx=True)        # (H, L, 1)
        norm = (acc_scratch[...] * inv_l).astype(dtype)           # (H, L, d_v)
        # Output projection: head-batched matmul, then a single reduce over heads
        # (replaces concat(heads) @ Wo and the old Python add chain).
        proj = lax.dot_general(norm, wo_ref[...], (((2,), (1,)), ((0,), (0,))),
                               preferred_element_type=jnp.float32)  # (H, L, d_model)
        out = jnp.sum(proj, axis=0) + bo_ref[...]                  # (L, d_model)
        # TODO(synk): d_model < 128 makes this a masked (lane-sparse) store; fine at
        # toy shapes, present a lane-dense output slab for tiny-d_model production use.
        o_ref[0] = out.astype(o_ref.dtype)


def prepare_attention_params(params, n_heads, d_qk, d_v, param_dtype=None):
    """Host-side, call ONCE at parameter load (hoisted out of the forward path).

    Folds the 1/sqrt(d_qk) softmax scale into the Q projection and re-lays the
    weights out so every kernel matmul is a single wide contraction. For peak MXU
    rate on v5e/v6e/v7x pass param_dtype=jnp.bfloat16 (and bf16 activations);
    on v7x prefer fp8 over int8 if quantizing (its MXU has no integer datapath).
    """
    wq, bq, wk, bk, wv, bv, wo, bo = params
    d_model = wq.shape[0]
    scale = 1.0 / math.sqrt(d_qk)
    wqt = (wq * scale).T                                  # (H*d_qk, d_model)
    bqt = (bq * scale).reshape(n_heads * d_qk, 1)
    wkt = wk.T                                            # (H*d_qk, d_model)
    bkt = bk.reshape(n_heads * d_qk, 1)
    wvt = wv.T                                            # (H*d_v, d_model)
    bvt = bv.reshape(n_heads * d_v, 1)
    wo_h = wo.reshape(n_heads, d_v, d_model)              # (H, d_v, d_model)
    bo2 = bo.reshape(1, d_model)
    prepared = (wqt, bqt, wkt, bkt, wvt, bvt, wo_h, bo2)
    if param_dtype is not None:
        prepared = tuple(p.astype(param_dtype) for p in prepared)
    return prepared


def attention_layer_forward(queries, keys, values, prepared_params,
                            n_heads, d_qk, d_v, attn_mask=None, block_s=None):
    """Pallas forward of AttentionLayer (output_attn=False, mix=False, dropout=0)."""
    # TODO(synk): attn_mask != None and output_attn=True paths are not lowered.
    assert attn_mask is None
    B, L, d_model = queries.shape
    _, S, _ = keys.shape
    H = n_heads
    wqt, bqt, wkt, bkt, wvt, bvt, wo_h, bo2 = prepared_params
    assert wqt.shape == (H * d_qk, d_model)

    if block_s is None:
        block_s = S if S <= 512 else 512
    assert S % block_s == 0 and (block_s == S or block_s % 8 == 0)
    grid = (B, S // block_s)
    # TODO(synk): one batch element per grid step; for tiny L/S block several batch
    #             elements per step to amortize the ~0.35us/step overhead.
    # TODO(synk): add an L tile axis (outer "parallel") for very long query lengths.

    kernel = partial(_attention_layer_kernel, n_heads=H, d_qk=d_qk, d_v=d_v)

    def const_spec(a):
        # Grid-invariant weights/biases (constant index_map -> never re-DMA'd).
        # TODO(synk): mark pipeline_mode=pl.Buffered(1) to drop their second buffer.
        nd = a.ndim
        return pl.BlockSpec(a.shape, lambda b, s, _nd=nd: (0,) * _nd)

    out = pl.pallas_call(
        kernel,
        out_shape=jax.ShapeDtypeStruct((B, L, d_model), queries.dtype),
        grid_spec=pltpu.PrefetchScalarGridSpec(
            num_scalar_prefetch=0,
            grid=grid,
            in_specs=[
                pl.BlockSpec((1, L, d_model), lambda b, s: (b, 0, 0)),        # queries
                pl.BlockSpec((1, block_s, d_model), lambda b, s: (b, s, 0)),  # keys
                pl.BlockSpec((1, block_s, d_model), lambda b, s: (b, s, 0)),  # values
                const_spec(wqt), const_spec(bqt),
                const_spec(wkt), const_spec(bkt),
                const_spec(wvt), const_spec(bvt),
                const_spec(wo_h), const_spec(bo2),
            ],
            out_specs=pl.BlockSpec((1, L, d_model), lambda b, s: (b, 0, 0)),
            scratch_shapes=[
                pltpu.VMEM((H, L, d_qk), queries.dtype),   # projected Q (per batch block)
                pltpu.VMEM((H, L, 1), jnp.float32),        # running max m
                pltpu.VMEM((H, L, 1), jnp.float32),        # running denom l
                pltpu.VMEM((H, L, d_v), jnp.float32),      # running numerator acc
            ],
        ),
        compiler_params=pltpu.CompilerParams(
            dimension_semantics=("parallel", "arbitrary"),
            # Sized with headroom for v7x's 64 MiB physical VMEM (128 MiB on v5e/v6e).
            vmem_limit_bytes=48 * 1024 * 1024,
        ),
    )(queries, keys, values, wqt, bqt, wkt, bkt, wvt, bvt, wo_h, bo2)
    return out, None


def _reference(queries, keys, values, params, n_heads, d_qk, d_v):
    """Pure-JAX reference mirroring the PyTorch module."""
    wq, bq, wk, bk, wv, bv, wo, bo = params
    B, L, _ = queries.shape
    _, S, _ = keys.shape
    H = n_heads
    Q = (queries @ wq + bq).reshape(B, L, H, d_qk)
    K = (keys @ wk + bk).reshape(B, S, H, d_qk)
    V = (values @ wv + bv).reshape(B, S, H, d_v)
    scores = jnp.einsum("blhd,bshd->bhls", Q, K) / math.sqrt(d_qk)
    attn = jax.nn.softmax(scores, axis=-1)
    out = jnp.einsum("bhls,bshd->blhd", attn, V).reshape(B, L, H * d_v)
    return out @ wo + bo


if __name__ == "__main__":
    # Small shapes consistent with the module.
    B, L, S = 2, 8, 8
    d_model, n_heads, d_qk, d_v = 32, 4, 8, 8

    key = jax.random.PRNGKey(0)
    ks = jax.random.split(key, 11)

    def lin_init(kw, fan_in, fan_out):
        bound = 1.0 / math.sqrt(fan_in)
        return jax.random.uniform(kw, (fan_in, fan_out), jnp.float32, -bound, bound)

    wq = lin_init(ks[0], d_model, d_qk * n_heads)
    bq = jax.random.uniform(ks[1], (d_qk * n_heads,), jnp.float32, -0.1, 0.1)
    wk = lin_init(ks[2], d_model, d_qk * n_heads)
    bk = jax.random.uniform(ks[3], (d_qk * n_heads,), jnp.float32, -0.1, 0.1)
    wv = lin_init(ks[4], d_model, d_v * n_heads)
    bv = jax.random.uniform(ks[5], (d_v * n_heads,), jnp.float32, -0.1, 0.1)
    wo = lin_init(ks[6], d_v * n_heads, d_model)
    bo = jax.random.uniform(ks[7], (d_model,), jnp.float32, -0.1, 0.1)
    params = (wq, bq, wk, bk, wv, bv, wo, bo)

    queries = jax.random.normal(ks[8], (B, L, d_model), jnp.float32)
    keys_in = jax.random.normal(ks[9], (B, S, d_model), jnp.float32)
    values_in = jax.random.normal(ks[10], (B, S, d_model), jnp.float32)

    # Weight re-layout + scale folding done ONCE at load (hoisted out of forward).
    prepared = prepare_attention_params(params, n_heads, d_qk, d_v)

    out, attn = attention_layer_forward(queries, keys_in, values_in, prepared,
                                        n_heads, d_qk, d_v, attn_mask=None)
    out = jax.block_until_ready(out)

    ref = _reference(queries, keys_in, values_in, params, n_heads, d_qk, d_v)
    assert attn is None
    # Slightly relaxed tolerance: softmax denominator uses the EUP approximate
    # reciprocal (pl.reciprocal(approx=True)).
    assert jnp.allclose(out, ref, atol=2e-3, rtol=2e-3), "mismatch vs reference"
    print("KERNEL_OK")
</pallas_src>

<mosaic_0001>
module attributes {stable_mosaic.version = 11 : i64} {
  func.func @_attention_layer_kernel(%arg0: i32, %arg1: i32, %arg2: memref<1x8x32xf32, #tpu.memory_space<vmem>>, %arg3: memref<1x8x32xf32, #tpu.memory_space<vmem>>, %arg4: memref<1x8x32xf32, #tpu.memory_space<vmem>>, %arg5: memref<32x32xf32, #tpu.memory_space<vmem>>, %arg6: memref<32x1xf32, #tpu.memory_space<vmem>>, %arg7: memref<32x32xf32, #tpu.memory_space<vmem>>, %arg8: memref<32x1xf32, #tpu.memory_space<vmem>>, %arg9: memref<32x32xf32, #tpu.memory_space<vmem>>, %arg10: memref<32x1xf32, #tpu.memory_space<vmem>>, %arg11: memref<4x8x32xf32, #tpu.memory_space<vmem>>, %arg12: memref<1x32xf32, #tpu.memory_space<vmem>>, %arg13: memref<1x8x32xf32, #tpu.memory_space<vmem>>, %arg14: memref<4x8x8xf32, #tpu.memory_space<vmem>>, %arg15: memref<4x8x1xf32, #tpu.memory_space<vmem>>, %arg16: memref<4x8x1xf32, #tpu.memory_space<vmem>>, %arg17: memref<4x8x8xf32, #tpu.memory_space<vmem>>) attributes {dimension_semantics = [#tpu.dimension_semantics<parallel>, #tpu.dimension_semantics<arbitrary>], iteration_bounds = array<i64: 2, 1>, scalar_prefetch = 0 : i64, scratch_operands = 4 : i64, tpu.core_type = #tpu.core_type<tc>, window_params = [{transform_indices = @transform_0, window_bounds = array<i64: 1, 8, 32>}, {transform_indices = @transform_1, window_bounds = array<i64: 1, 8, 32>}, {transform_indices = @transform_2, window_bounds = array<i64: 1, 8, 32>}, {pipeline_mode = #tpu.pipeline_mode<synchronous>, transform_indices = @transform_3, window_bounds = array<i64: 32, 32>}, {pipeline_mode = #tpu.pipeline_mode<synchronous>, transform_indices = @transform_4, window_bounds = array<i64: 32, 1>}, {pipeline_mode = #tpu.pipeline_mode<synchronous>, transform_indices = @transform_5, window_bounds = array<i64: 32, 32>}, {pipeline_mode = #tpu.pipeline_mode<synchronous>, transform_indices = @transform_6, window_bounds = array<i64: 32, 1>}, {pipeline_mode = #tpu.pipeline_mode<synchronous>, transform_indices = @transform_7, window_bounds = array<i64: 32, 32>}, {pipeline_mode = #tpu.pipeline_mode<synchronous>, transform_indices = @transform_8, window_bounds = array<i64: 32, 1>}, {pipeline_mode = #tpu.pipeline_mode<synchronous>, transform_indices = @transform_9, window_bounds = array<i64: 4, 8, 32>}, {pipeline_mode = #tpu.pipeline_mode<synchronous>, transform_indices = @transform_10, window_bounds = array<i64: 1, 32>}, {transform_indices = @transform_11, window_bounds = array<i64: 1, 8, 32>}]} {
    %c0_i32 = arith.constant 0 : i32
    %0 = arith.cmpi eq, %arg1, %c0_i32 : i32
    %1 = arith.extui %0 : i1 to i32
    %c0_i32_0 = arith.constant 0 : i32
    %2 = arith.cmpi ne, %1, %c0_i32_0 : i32
    scf.if %2 {
      %c0_42 = arith.constant 0 : index
      %c0_43 = arith.constant 0 : index
      %c0_44 = arith.constant 0 : index
      %46 = vector.load %arg2[%c0_42, %c0_43, %c0_44] : memref<1x8x32xf32, #tpu.memory_space<vmem>>, vector<1x8x32xf32>
      %47 = vector.shape_cast %46 : vector<1x8x32xf32> to vector<8x32xf32>
      %c0_45 = arith.constant 0 : index
      %c0_46 = arith.constant 0 : index
      %48 = vector.load %arg5[%c0_45, %c0_46] : memref<32x32xf32, #tpu.memory_space<vmem>>, vector<32x32xf32>
      %cst_47 = arith.constant dense<0.000000e+00> : vector<32x8xf32>
      %49 = tpu.matmul %48, %47, %cst_47 {dimension_numbers = #tpu.dot_dimension_numbers<[1], [1], [0], [0], [0, 0, 1, 0], [], []>} : vector<32x32xf32>, vector<8x32xf32>, vector<32x8xf32> -> vector<32x8xf32>
      %c0_48 = arith.constant 0 : index
      %c0_49 = arith.constant 0 : index
      %50 = vector.load %arg6[%c0_48, %c0_49] : memref<32x1xf32, #tpu.memory_space<vmem>>, vector<32x1xf32>
      %51 = vector.broadcast %50 : vector<32x1xf32> to vector<32x8xf32>
      %52 = arith.addf %49, %51 : vector<32x8xf32>
      %53 = vector.shape_cast %52 : vector<32x8xf32> to vector<4x8x8xf32>
      %54 = tpu.transpose %53, [0, 2, 1] : vector<4x8x8xf32> -> vector<4x8x8xf32>
      %c0_50 = arith.constant 0 : index
      %c0_51 = arith.constant 0 : index
      %c0_52 = arith.constant 0 : index
      %55 = vector.load %arg14[%c0_50, %c0_51, %c0_52] : memref<4x8x8xf32, #tpu.memory_space<vmem>>, vector<4x8x8xf32>
      tpu.vector_store %arg14[%c0_50, %c0_51, %c0_52], %54 {strides = array<i32>} : memref<4x8x8xf32, #tpu.memory_space<vmem>>, vector<4x8x8xf32>,
      %cst_53 = arith.constant 0xFF800000 : f32
      %56 = vector.broadcast %cst_53 : f32 to vector<4x8x1xf32>
      %c0_54 = arith.constant 0 : index
      %c0_55 = arith.constant 0 : index
      %c0_56 = arith.constant 0 : index
      %57 = vector.load %arg15[%c0_54, %c0_55, %c0_56] : memref<4x8x1xf32, #tpu.memory_space<vmem>>, vector<4x8x1xf32>
      tpu.vector_store %arg15[%c0_54, %c0_55, %c0_56], %56 {strides = array<i32>} : memref<4x8x1xf32, #tpu.memory_space<vmem>>, vector<4x8x1xf32>,
      %cst_57 = arith.constant 0.000000e+00 : f32
      %58 = vector.broadcast %cst_57 : f32 to vector<4x8x1xf32>
      %c0_58 = arith.constant 0 : index
      %c0_59 = arith.constant 0 : index
      %c0_60 = arith.constant 0 : index
      %59 = vector.load %arg16[%c0_58, %c0_59, %c0_60] : memref<4x8x1xf32, #tpu.memory_space<vmem>>, vector<4x8x1xf32>
      tpu.vector_store %arg16[%c0_58, %c0_59, %c0_60], %58 {strides = array<i32>} : memref<4x8x1xf32, #tpu.memory_space<vmem>>, vector<4x8x1xf32>,
      %cst_61 = arith.constant 0.000000e+00 : f32
      %60 = vector.broadcast %cst_61 : f32 to vector<4x8x8xf32>
      %c0_62 = arith.constant 0 : index
      %c0_63 = arith.constant 0 : index
      %c0_64 = arith.constant 0 : index
      %61 = vector.load %arg17[%c0_62, %c0_63, %c0_64] : memref<4x8x8xf32, #tpu.memory_space<vmem>>, vector<4x8x8xf32>
      tpu.vector_store %arg17[%c0_62, %c0_63, %c0_64], %60 {strides = array<i32>} : memref<4x8x8xf32, #tpu.memory_space<vmem>>, vector<4x8x8xf32>,
    } else {
    }
    %c0 = arith.constant 0 : index
    %c0_1 = arith.constant 0 : index
    %c0_2 = arith.constant 0 : index
    %3 = vector.load %arg3[%c0, %c0_1, %c0_2] : memref<1x8x32xf32, #tpu.memory_space<vmem>>, vector<1x8x32xf32>
    %4 = vector.shape_cast %3 : vector<1x8x32xf32> to vector<8x32xf32>
    %c0_3 = arith.constant 0 : index
    %c0_4 = arith.constant 0 : index
    %5 = vector.load %arg7[%c0_3, %c0_4] : memref<32x32xf32, #tpu.memory_space<vmem>>, vector<32x32xf32>
    %cst = arith.constant dense<0.000000e+00> : vector<32x8xf32>
    %6 = tpu.matmul %5, %4, %cst {dimension_numbers = #tpu.dot_dimension_numbers<[1], [1], [0], [0], [0, 0, 1, 0], [], []>} : vector<32x32xf32>, vector<8x32xf32>, vector<32x8xf32> -> vector<32x8xf32>
    %c0_5 = arith.constant 0 : index
    %c0_6 = arith.constant 0 : index
    %7 = vector.load %arg8[%c0_5, %c0_6] : memref<32x1xf32, #tpu.memory_space<vmem>>, vector<32x1xf32>
    %8 = vector.broadcast %7 : vector<32x1xf32> to vector<32x8xf32>
    %9 = arith.addf %6, %8 : vector<32x8xf32>
    %c0_7 = arith.constant 0 : index
    %c0_8 = arith.constant 0 : index
    %c0_9 = arith.constant 0 : index
    %10 = vector.load %arg4[%c0_7, %c0_8, %c0_9] : memref<1x8x32xf32, #tpu.memory_space<vmem>>, vector<1x8x32xf32>
    %11 = vector.shape_cast %10 : vector<1x8x32xf32> to vector<8x32xf32>
    %c0_10 = arith.constant 0 : index
    %c0_11 = arith.constant 0 : index
    %12 = vector.load %arg9[%c0_10, %c0_11] : memref<32x32xf32, #tpu.memory_space<vmem>>, vector<32x32xf32>
    %cst_12 = arith.constant dense<0.000000e+00> : vector<32x8xf32>
    %13 = tpu.matmul %12, %11, %cst_12 {dimension_numbers = #tpu.dot_dimension_numbers<[1], [1], [0], [0], [0, 0, 1, 0], [], []>} : vector<32x32xf32>, vector<8x32xf32>, vector<32x8xf32> -> vector<32x8xf32>
    %c0_13 = arith.constant 0 : index
    %c0_14 = arith.constant 0 : index
    %14 = vector.load %arg10[%c0_13, %c0_14] : memref<32x1xf32, #tpu.memory_space<vmem>>, vector<32x1xf32>
    %15 = vector.broadcast %14 : vector<32x1xf32> to vector<32x8xf32>
    %16 = arith.addf %13, %15 : vector<32x8xf32>
    %17 = vector.shape_cast %9 : vector<32x8xf32> to vector<4x8x8xf32>
    %18 = vector.shape_cast %16 : vector<32x8xf32> to vector<4x8x8xf32>
    %c0_15 = arith.constant 0 : index
    %c0_16 = arith.constant 0 : index
    %c0_17 = arith.constant 0 : index
    %19 = vector.load %arg14[%c0_15, %c0_16, %c0_17] : memref<4x8x8xf32, #tpu.memory_space<vmem>>, vector<4x8x8xf32>
    %cst_18 = arith.constant dense<0.000000e+00> : vector<4x8x8xf32>
    %20 = tpu.matmul %19, %17, %cst_18 {dimension_numbers = #tpu.dot_dimension_numbers<[2], [1], [1], [2], [0, 0, 0, 1, 1, 2], [0], [0]>} : vector<4x8x8xf32>, vector<4x8x8xf32>, vector<4x8x8xf32> -> vector<4x8x8xf32>
    %c0_19 = arith.constant 0 : index
    %c0_20 = arith.constant 0 : index
    %c0_21 = arith.constant 0 : index
    %21 = vector.load %arg15[%c0_19, %c0_20, %c0_21] : memref<4x8x1xf32, #tpu.memory_space<vmem>>, vector<4x8x1xf32>
    %cst_22 = arith.constant dense<0xFF800000> : vector<4x8xf32>
    %22 = vector.multi_reduction <maximumf>, %20, %cst_22 [2] : vector<4x8x8xf32> to vector<4x8xf32>
    %23 = vector.shape_cast %22 : vector<4x8xf32> to vector<4x8x1xf32>
    %24 = arith.maximumf %21, %23 : vector<4x8x1xf32>
    %25 = arith.subf %21, %24 : vector<4x8x1xf32>
    %26 = math.exp %25 : vector<4x8x1xf32>
    %27 = vector.broadcast %24 : vector<4x8x1xf32> to vector<4x8x8xf32>
    %28 = arith.subf %20, %27 : vector<4x8x8xf32>
    %29 = math.exp %28 : vector<4x8x8xf32>
    %c0_23 = arith.constant 0 : index
    %c0_24 = arith.constant 0 : index
    %c0_25 = arith.constant 0 : index
    %30 = vector.load %arg16[%c0_23, %c0_24, %c0_25] : memref<4x8x1xf32, #tpu.memory_space<vmem>>, vector<4x8x1xf32>
    %31 = arith.mulf %26, %30 : vector<4x8x1xf32>
    %cst_26 = arith.constant dense<0.000000e+00> : vector<4x8xf32>
    %32 = vector.multi_reduction <add>, %29, %cst_26 [2] : vector<4x8x8xf32> to vector<4x8xf32>
    %33 = vector.shape_cast %32 : vector<4x8xf32> to vector<4x8x1xf32>
    %34 = arith.addf %31, %33 : vector<4x8x1xf32>
    %c0_27 = arith.constant 0 : index
    %c0_28 = arith.constant 0 : index
    %c0_29 = arith.constant 0 : index
    %35 = vector.load %arg16[%c0_27, %c0_28, %c0_29] : memref<4x8x1xf32, #tpu.memory_space<vmem>>, vector<4x8x1xf32>
    tpu.vector_store %arg16[%c0_27, %c0_28, %c0_29], %34 {strides = array<i32>} : memref<4x8x1xf32, #tpu.memory_space<vmem>>, vector<4x8x1xf32>,
    %cst_30 = arith.constant dense<0.000000e+00> : vector<4x8x8xf32>
    %36 = tpu.matmul %29, %18, %cst_30 {dimension_numbers = #tpu.dot_dimension_numbers<[2], [2], [1], [1], [0, 0, 0, 1, 1, 1], [0], [0]>} : vector<4x8x8xf32>, vector<4x8x8xf32>, vector<4x8x8xf32> -> vector<4x8x8xf32>
    %c0_31 = arith.constant 0 : index
    %c0_32 = arith.constant 0 : index
    %c0_33 = arith.constant 0 : index
    %37 = vector.load %arg17[%c0_31, %c0_32, %c0_33] : memref<4x8x8xf32, #tpu.memory_space<vmem>>, vector<4x8x8xf32>
    %38 = vector.broadcast %26 : vector<4x8x1xf32> to vector<4x8x8xf32>
    %39 = arith.mulf %38, %37 : vector<4x8x8xf32>
    %40 = arith.addf %39, %36 : vector<4x8x8xf32>
    %c0_34 = arith.constant 0 : index
    %c0_35 = arith.constant 0 : index
    %c0_36 = arith.constant 0 : index
    %41 = vector.load %arg17[%c0_34, %c0_35, %c0_36] : memref<4x8x8xf32, #tpu.memory_space<vmem>>, vector<4x8x8xf32>
    tpu.vector_store %arg17[%c0_34, %c0_35, %c0_36], %40 {strides = array<i32>} : memref<4x8x8xf32, #tpu.memory_space<vmem>>, vector<4x8x8xf32>,
    %c0_37 = arith.constant 0 : index
    %c0_38 = arith.constant 0 : index
    %c0_39 = arith.constant 0 : index
    %42 = vector.load %arg15[%c0_37, %c0_38, %c0_39] : memref<4x8x1xf32, #tpu.memory_space<vmem>>, vector<4x8x1xf32>
    tpu.vector_store %arg15[%c0_37, %c0_38, %c0_39], %24 {strides = array<i32>} : memref<4x8x1xf32, #tpu.memory_space<vmem>>, vector<4x8x1xf32>,
    %c0_i32_40 = arith.constant 0 : i32
    %43 = arith.cmpi eq, %arg1, %c0_i32_40 : i32
    %44 = arith.extui %43 : i1 to i32
    %c0_i32_41 = arith.constant 0 : i32
    %45 = arith.cmpi ne, %44, %c0_i32_41 : i32
    scf.if %45 {
      %c0_42 = arith.constant 0 : index
      %c0_43 = arith.constant 0 : index
      %c0_44 = arith.constant 0 : index
      %46 = vector.load %arg16[%c0_42, %c0_43, %c0_44] : memref<4x8x1xf32, #tpu.memory_space<vmem>>, vector<4x8x1xf32>
      %47 = tpu.reciprocal %46 {approx = true} : vector<4x8x1xf32> -> vector<4x8x1xf32>
      %c0_45 = arith.constant 0 : index
      %c0_46 = arith.constant 0 : index
      %c0_47 = arith.constant 0 : index
      %48 = vector.load %arg17[%c0_45, %c0_46, %c0_47] : memref<4x8x8xf32, #tpu.memory_space<vmem>>, vector<4x8x8xf32>
      %49 = vector.broadcast %47 : vector<4x8x1xf32> to vector<4x8x8xf32>
      %50 = arith.mulf %48, %49 : vector<4x8x8xf32>
      %c0_48 = arith.constant 0 : index
      %c0_49 = arith.constant 0 : index
      %c0_50 = arith.constant 0 : index
      %51 = vector.load %arg11[%c0_48, %c0_49, %c0_50] : memref<4x8x32xf32, #tpu.memory_space<vmem>>, vector<4x8x32xf32>
      %cst_51 = arith.constant dense<0.000000e+00> : vector<4x8x32xf32>
      %52 = tpu.matmul %50, %51, %cst_51 {dimension_numbers = #tpu.dot_dimension_numbers<[2], [1], [1], [2], [0, 0, 0, 1, 1, 2], [0], [0]>} : vector<4x8x8xf32>, vector<4x8x32xf32>, vector<4x8x32xf32> -> vector<4x8x32xf32>
      %cst_52 = arith.constant dense<0.000000e+00> : vector<8x32xf32>
      %53 = vector.multi_reduction <add>, %52, %cst_52 [0] : vector<4x8x32xf32> to vector<8x32xf32>
      %c0_53 = arith.constant 0 : index
      %c0_54 = arith.constant 0 : index
      %54 = vector.load %arg12[%c0_53, %c0_54] : memref<1x32xf32, #tpu.memory_space<vmem>>, vector<1x32xf32>
      %55 = vector.broadcast %54 : vector<1x32xf32> to vector<8x32xf32>
      %56 = arith.addf %53, %55 : vector<8x32xf32>
      %c0_55 = arith.constant 0 : index
      %c0_56 = arith.constant 0 : index
      %c0_57 = arith.constant 0 : index
      %57 = vector.load %arg13[%c0_55, %c0_56, %c0_57] : memref<1x8x32xf32, #tpu.memory_space<vmem>>, vector<1x8x32xf32>
      %58 = vector.shape_cast %57 : vector<1x8x32xf32> to vector<8x32xf32>
      %59 = vector.shape_cast %56 : vector<8x32xf32> to vector<1x8x32xf32>
      tpu.vector_store %arg13[%c0_55, %c0_56, %c0_57], %59 {strides = array<i32>} : memref<1x8x32xf32, #tpu.memory_space<vmem>>, vector<1x8x32xf32>,
    } else {
    }
    return
  }
  func.func @transform_0(%arg0: i32, %arg1: i32) -> (i32, i32, i32) {
    %c0_i32 = arith.constant 0 : i32
    %c0_i32_0 = arith.constant 0 : i32
    %c0_i32_1 = arith.constant 0 : i32
    return %arg0, %c0_i32, %c0_i32_0 : i32, i32, i32
  }
  func.func @transform_1(%arg0: i32, %arg1: i32) -> (i32, i32, i32) {
    %c0_i32 = arith.constant 0 : i32
    %c0_i32_0 = arith.constant 0 : i32
    return %arg0, %arg1, %c0_i32 : i32, i32, i32
  }
  func.func @transform_2(%arg0: i32, %arg1: i32) -> (i32, i32, i32) {
    %c0_i32 = arith.constant 0 : i32
    %c0_i32_0 = arith.constant 0 : i32
    return %arg0, %arg1, %c0_i32 : i32, i32, i32
  }
  func.func @transform_3(%arg0: i32, %arg1: i32) -> (i32, i32) {
    %c0_i32 = arith.constant 0 : i32
    %c0_i32_0 = arith.constant 0 : i32
    %c0_i32_1 = arith.constant 0 : i32
    return %c0_i32, %c0_i32_0 : i32, i32
  }
  func.func @transform_4(%arg0: i32, %arg1: i32) -> (i32, i32) {
    %c0_i32 = arith.constant 0 : i32
    %c0_i32_0 = arith.constant 0 : i32
    %c0_i32_1 = arith.constant 0 : i32
    return %c0_i32, %c0_i32_0 : i32, i32
  }
  func.func @transform_5(%arg0: i32, %arg1: i32) -> (i32, i32) {
    %c0_i32 = arith.constant 0 : i32
    %c0_i32_0 = arith.constant 0 : i32
    %c0_i32_1 = arith.constant 0 : i32
    return %c0_i32, %c0_i32_0 : i32, i32
  }
  func.func @transform_6(%arg0: i32, %arg1: i32) -> (i32, i32) {
    %c0_i32 = arith.constant 0 : i32
    %c0_i32_0 = arith.constant 0 : i32
    %c0_i32_1 = arith.constant 0 : i32
    return %c0_i32, %c0_i32_0 : i32, i32
  }
  func.func @transform_7(%arg0: i32, %arg1: i32) -> (i32, i32) {
    %c0_i32 = arith.constant 0 : i32
    %c0_i32_0 = arith.constant 0 : i32
    %c0_i32_1 = arith.constant 0 : i32
    return %c0_i32, %c0_i32_0 : i32, i32
  }
  func.func @transform_8(%arg0: i32, %arg1: i32) -> (i32, i32) {
    %c0_i32 = arith.constant 0 : i32
    %c0_i32_0 = arith.constant 0 : i32
    %c0_i32_1 = arith.constant 0 : i32
    return %c0_i32, %c0_i32_0 : i32, i32
  }
  func.func @transform_9(%arg0: i32, %arg1: i32) -> (i32, i32, i32) {
    %c0_i32 = arith.constant 0 : i32
    %c0_i32_0 = arith.constant 0 : i32
    %c0_i32_1 = arith.constant 0 : i32
    %c0_i32_2 = arith.constant 0 : i32
    return %c0_i32, %c0_i32_0, %c0_i32_1 : i32, i32, i32
  }
  func.func @transform_10(%arg0: i32, %arg1: i32) -> (i32, i32) {
    %c0_i32 = arith.constant 0 : i32
    %c0_i32_0 = arith.constant 0 : i32
    %c0_i32_1 = arith.constant 0 : i32
    return %c0_i32, %c0_i32_0 : i32, i32
  }
  func.func @transform_11(%arg0: i32, %arg1: i32) -> (i32, i32, i32) {
    %c0_i32 = arith.constant 0 : i32
    %c0_i32_0 = arith.constant 0 : i32
    %c0_i32_1 = arith.constant 0 : i32
    return %arg0, %c0_i32, %c0_i32_0 : i32, i32, i32
  }
}

</mosaic_0001>

<bundles_post_ra>
// kernel: tpu_custom_call.1
= control target key start
LH: loop header
LB: loop body
LE: loop exit
PB: predicated region body
PF: predicated region fallthrough
CT: control target
= control target key end

     0   :  { %s3302_s0 = inlined_call_operand.hbm [shape: f32[2,8,32], index: 0, kind: input, shape index: {}]   ;;  %s3303_s1 = inlined_call_operand.hbm [shape: f32[2,8,32], index: 1, kind: input, shape index: {}]   ;;  %s3304_s2 = inlined_call_operand.hbm [shape: f32[2,8,32], index: 2, kind: input, shape index: {}]   ;;  %s3305_s3 = inlined_call_operand.vmem [shape: f32[32,32], index: 3, kind: input, shape index: {}]   ;;  %s3306_s4 = inlined_call_operand.vmem [shape: f32[32,1], index: 4, kind: input, shape index: {}]   ;;  %s3307_s5 = inlined_call_operand.vmem [shape: f32[32,32], index: 5, kind: input, shape index: {}]   ;;  %s3308_s6 = inlined_call_operand.vmem [shape: f32[32,1], index: 6, kind: input, shape index: {}]   ;;  %s3309_s7 = inlined_call_operand.vmem [shape: f32[32,32], index: 7, kind: input, shape index: {}]   ;;  %s3310_s8 = inlined_call_operand.vmem [shape: f32[32,1], index: 8, kind: input, shape index: {}]   ;;  %s3311_s9 = inlined_call_operand.hbm [shape: f32[4,8,32], index: 9, kind: input, shape index: {}]   ;;  %s3312_s10 = inlined_call_operand.vmem [shape: f32[1,32], index: 10, kind: input, shape index: {}]   ;;  %s3313_s11 = inlined_call_operand.hbm [shape: f32[2,8,32], index: 11, kind: output, shape index: {}]  }
   0x1   :  { %3326 = sst [smem:[#allocation27_spill]] %s3303_s1 }
   0x2   :  { %3327 = sst [smem:[#allocation28_spill]] %s3312_s10 }
   0x3   :  { %3328 = sst [smem:[#allocation29_spill]] %s3313_s11 }
   0x4   :  { %16 = vsyncpa [#allocation7], 0 }
   0x5   :  { %18 = vsyncpa [#allocation7 + $0x1], 0 }
   0x6   :  { %19 = vsyncpa [#allocation10], 0 }
   0x7   :  { %21 = vsyncpa [#allocation10 + $0x1], 0 }
   0x8   :  { %22 = vsyncpa [#allocation13], 0 }
   0x9   :  { %23 = vsyncpa [#allocation8], 0 }
   0xa   :  { %25 = vsyncpa [#allocation8 + $0x1], 0  ;;  %s2839_s17 = smov 0   ;;  %s2841_s18 = smov 0  }
   0xb   :  { %s2843_s19 = smov 0   ;;  %s2845_s20 = smov 0  }
   0xc   :  { %s2847_s21 = smov 0   ;;  %s2849_s22 = smov 0  }
   0xd LB: > { %3329 = sst [smem:[#allocation19_spill]] %s2746_s17  ;;  %s43_s23 = sadd.s32 1, %s2762_s21  ;;  %s2766_s22 = sphi %s2849_s22, %s31_s22   ;;  %s2762_s21 = sphi %s2847_s21, %s3360_s21   ;;  %s2758_s20 = sphi %s2845_s20, %s3359_s20   ;;  %s2754_s19 = sphi %s2843_s19, %s3363_s19   ;;  %s2750_s18 = sphi %s2841_s18, %s3362_s18   ;;  %s2746_s17 = sphi %s2839_s17, %s3361_s17  }
   0xe   : > { %3330 = sst [smem:[#allocation20_spill]] %s2758_s20  ;;  %s50_s24 = sadd.s32 1, %s2754_s19 }
   0xf   : > { %3331 = sst [smem:[#allocation21_spill]] %s2762_s21  ;;  %p45_p0 = scmp.ge.s32.totalorder %s43_s23, 2 }
  0x10   : > { %3332 = sst [smem:[#allocation22_spill]] %s2766_s22  ;;  %p57_p1 = scmp.ne.s32.totalorder %s2754_s19, %s2750_s18 }
  0x11   : > { %p58_p2 = scmp.eq.s32.totalorder %s2766_s22, 0  ;;  %s3365_s23 = smov (%p45_p0, %s43_s23), 0 }
  0x12   : > { %3333 = sst [smem:[#allocation23_spill]] %s3365_s23  ;;  %p2484_p5 = scmp.lt.s32.totalorder %s2766_s22, 2 }
  0x13   : > { %p59_p4 = por %p58_p2, %p57_p1  ;;  %s47_s25 = ssub.s32 %s2762_s21, %s3365_s23 }
  0x14   : > { %s3314_s26 = sand.u32 1, %s2754_s19   ;;  %p48_p6 = scmp.eq.s32.totalorder %s47_s25, 0 }
  0x15   : > { %s2886_s27 = sshll.u32 %s3314_s26, 3  ;;  %s2889_s28 = sshll.u32 %s2762_s21, 7 }
  0x16   : > { %p2891_p7 = pnand %p2484_p5, %p59_p4  ;;  %s389_s12 = sand.u32 1, %s2766_s22  }
  0x17   : > { %s2896_s30 = scalar_select %p48_p6, %s2754_s19, %s50_s24  }
  0x18   : > { %s3336_s1 = sld [smem:[#allocation27_spill]]  ;;  %s393_s16 = scalar_lea.vmem [#allocation9], %s2886_s27 }
  0x19   : > { %3335 = sst [smem:[#allocation24_spill]] %s2896_s30  ;;  %s401_s25 = sshll.u32 %s393_s16, 4  ;;  %s402_s25 = int_to_ptr.vmem [resolvable:$true] %s401_s25 }
  0x1a   : > { %s2904_s26 = scalar_lea.sflag [#allocation10], %s389_s12  ;;  %p3321_p8 = pneg %p2891_p7 }
  0x1b   : > { %s2581_s23 = scalar_lea.vmem %s402_s25, 128  ;;  %s2768_s24 = smov [#allocation9]  }
  0x1c   : > { %p2582_p9 = scmp.ne.s32.totalorder %s402_s25, %s2581_s23  ;;  %s2586_s21 = sshll.u32 %s2768_s24, 4  ;;  %s2587_s21 = int_to_ptr.vmem [resolvable:$false] %s2586_s21 }
  0x1d   : > { %s2588_s30 = scalar_lea.vmem %s2587_s21, 256  ;;  %p2589_p12 = scmp.lt.s32.totalorder %s402_s25, %s2587_s21 }
  0x1e   : > { %s399_s15 = scalar_lea.hbm %s3336_s1, %s2889_s28  ;;  %p2584_p10 = pnand %p2582_p9, %p3321_p8 }
  0x1f   : > { %p2590_p13 = scmp.lt.s32.totalorder %s2588_s30, %s2581_s23 }
  0x20   : > { %p2585_p11 = pneg %p2584_p10 }
  0x21   : > { %p2591_p0 = por %p2590_p13, %p2589_p12 }
  0x23   : > { %p2592_p2 = pnand %p2591_p0, %p2585_p11 }
  0x25   : > { %2595 = shalt.err (!%p2592_p2)
}
  0x26   : > { %2475 = dma.hbm_to_vmem [thread:$0]  (!%p2891_p7), %s399_s15, 128, %s402_s25, %s2904_s26  }
  0x27   : > { %s2915_s12 = sadd.s32 4294967295, %s2766_s22   ;;  %s2278_s21 = sadd.s32 4294967294, %s2766_s22  }
  0x28   : > { %p63_p4 = scmp.ne.s32.totalorder %s2750_s18, %s2746_s17  ;;  %p3320_p5 = scmp.eq.s32.totalorder %s2915_s12, 0 }
  0x29   : > { %p311_p6 = scmp.eq.s32.totalorder %s2915_s12, 1  ;;  %p317_p9 = scmp.eq.s32.totalorder %s2278_s21, 1 }
  0x2a   : > { %p2279_p10 = scmp.ge.s32.totalorder %s2766_s22, 1  ;;  %p2925_p11 = por %p3320_p5, %p63_p4 }
  0x2b   : > { %p2932_p12 = por %p311_p6, %p57_p1  ;;  %p2936_p13 = por %p317_p9, %p63_p4 }
  0x2c   : > { %p324_p0 = scmp.lt.s32.totalorder %s2766_s22, 3  ;;  %s2769_s15 = smov [#allocation12]  }
  0x2d   : > { %s3338_s30 = scalar_select %p2932_p12, 1, 0 }
  0x2e   : > { %s3340_s13 = scalar_select %p2936_p13, 1, 0 }
  0x2f   : > { %3339 = sst [smem:[#allocation25_spill]] %s3338_s30  ;;  %p2941_p2 = pnand %p2279_p10, %p324_p0 }
  0x30   : > { %3341 = sst [smem:[#allocation26_spill]] %s3340_s13  ;;  %s354_s16 = sshll.u32 %s2769_s15, 4  ;;  %s355_s16 = int_to_ptr.vmem [resolvable:$true] %s354_s16 }
  0x31   : > { %p2465_p3 = pneg %p2941_p2  ;;  %s375_s22 = scalar_lea.vmem [#allocation6], %s2886_s27 }
  0x32   : > { %s382_s13 = sshll.u32 %s375_s22, 4  ;;  %s2607_s15 = scalar_lea.vmem %s355_s16, 512  ;;  %s2958_s13 = int_to_ptr.vmem [resolvable:$true] %s382_s13 }
  0x33   : > { %p2949_p1 = pnand %p2465_p3, %p3320_p5  ;;  %p2608_p6 = scmp.ne.s32.totalorder %s355_s16, %s2607_s15 }
  0x34   : > { %p2615_p0 = scmp.lt.s32.totalorder %s355_s16, %s355_s16  ;;  %p2616_p3 = scmp.lt.s32.totalorder %s2607_s15, %s2607_s15 }
  0x35   : > { %p2598_p4 = pneg %p2949_p1 }
  0x36   : > { %p2617_p5 = por %p2616_p3, %p2615_p0 }
  0x37   : > { %p2610_p9 = pnand %p2608_p6, %p2598_p4 }
  0x39   : > { %p2611_p10 = pneg %p2610_p9 }
  0x3b   : > { %p2618_p8 = pnand %p2617_p5, %p2611_p10 }
  0x3d   : > { %2621 = shalt.err (!%p2618_p8)
}
  0x3e   : > { %s2770_s17 = smov 128   ;;  %s2771_s22 = smov 8  }
  0x3f   : > { %2468 = dma.hbm_to_vmem [thread:$0]  (!%p2949_p1), %s3311_s9, 512, %s355_s16, [#allocation13], %s2770_s17, %s2770_s17, %s2771_s22  }
  0x40   : > { %s3344_s1 = sand.u32 1, %s2754_s19   ;;  %s2635_s10 = scalar_lea.vmem %s2958_s13, 128 }
  0x41   : > { %s372_s11 = scalar_lea.sflag [#allocation7], %s3344_s1  ;;  %p2636_p4 = scmp.ne.s32.totalorder %s2958_s13, %s2635_s10 }
  0x42   : > { %p3345_p5 = pneg %p2891_p7  ;;  %s2772_s15 = smov [#allocation6]  }
  0x43   : > { %s2640_s30 = sshll.u32 %s2772_s15, 4  ;;  %s2641_s30 = int_to_ptr.vmem [resolvable:$false] %s2640_s30 }
  0x44   : > { %p2638_p8 = pnand %p2636_p4, %p3345_p5  ;;  %s2642_s20 = scalar_lea.vmem %s2641_s30, 256 }
  0x45   : > { %p2643_p9 = scmp.lt.s32.totalorder %s2958_s13, %s2641_s30  ;;  %p2644_p10 = scmp.lt.s32.totalorder %s2642_s20, %s2635_s10 }
  0x46   : > { %p2639_p6 = pneg %p2638_p8 }
  0x47   : > { %p2645_p0 = por %p2644_p10, %p2643_p9 }
  0x49   : > { %p2646_p3 = pnand %p2645_p0, %p2639_p6 }
  0x4b   : > { %2649 = shalt.err (!%p2646_p3)
}
  0x4c   : > { %s3346_s16 = scalar_lea.hbm %s3302_s0, %s2889_s28  ;;  %s418_s30 = scalar_lea.hbm %s3304_s2, %s2889_s28 }
  0x4d   : > { %2472 = dma.hbm_to_vmem [thread:$0]  (!%p2891_p7), %s3346_s16, 128, %s2958_s13, %s372_s11  }
  0x4e   : > { %s412_s10 = scalar_lea.vmem [#allocation11], %s2886_s27  ;;  %p3347_p4 = pmov %p3345_p5 }
  0x4f   : > { %s420_s20 = sshll.u32 %s412_s10, 4  ;;  %s2773_s21 = smov [#allocation11]   ;;  %s421_s20 = int_to_ptr.vmem [resolvable:$true] %s420_s20 }
  0x50   : > { %s2663_s24 = scalar_lea.vmem %s421_s20, 128  ;;  %s2668_s15 = sshll.u32 %s2773_s21, 4  ;;  %s2669_s15 = int_to_ptr.vmem [resolvable:$false] %s2668_s15 }
  0x51   : > { %p2664_p1 = scmp.ne.s32.totalorder %s421_s20, %s2663_s24  ;;  %s2670_s17 = scalar_lea.vmem %s2669_s15, 256 }
  0x52   : > { %p2671_p6 = scmp.lt.s32.totalorder %s421_s20, %s2669_s15  ;;  %p2672_p9 = scmp.lt.s32.totalorder %s2670_s17, %s2663_s24 }
  0x53   : > { %p2666_p5 = pnand %p2664_p1, %p3347_p4 }
  0x54   : > { %p2673_p10 = por %p2672_p9, %p2671_p6 }
  0x55   : > { %p2667_p8 = pneg %p2666_p5 }
  0x57   : > { %p2674_p0 = pnand %p2673_p10, %p2667_p8 }
  0x59   : > { %2677 = shalt.err (!%p2674_p0)
}
  0x5a   : > { %2478 = dma.hbm_to_vmem [thread:$0]  (!%p2891_p7), %s418_s30, 128, %s421_s20, %s2904_s26  }
  0x5b   : > { %429 = sbr.rel (%p2941_p2) target bundleno = 1427 (0x593), region = 64  ;;  %s2997_s11 = sand.u32 (!%p2941_p2), 1, %s2750_s18  }
  0x5c   : > { %s3000_s27 = sshll.u32 (!%p2941_p2), %s2997_s11, 3  ;;  %s432_s28 = scalar_lea.sflag (!%p2941_p2), [#allocation7], %s2997_s11 }
  0x5d   : > { %s435_s13 = scalar_lea.vmem (!%p2941_p2), [#allocation6], %s3000_s27 }
  0x60   : > { %2729 = dma.done.wait (%p2925_p11), %s432_s28, 128  }
  0x61   : > { %2731 = vsyncadd (%p2925_p11), %s432_s28, 4294967168  ;;  %s440_s26 = sand.u32 1, %s2915_s12   ;;  %s444_s14 = scalar_lea.vmem [#allocation9], %s3000_s27 }
  0x62   : > { %s441_s29 = scalar_lea.sflag [#allocation10], %s440_s26 }
  0x63   : > { %2733 = dma.done.wait (%p2925_p11), %s441_s29, 256  }
  0x64   : > { %2735 = vsyncadd (%p2925_p11), %s441_s29, 4294967040  ;;  %s453_s1 = scalar_lea.vmem [#allocation11], %s3000_s27  ;;  %p3348_p7 = scmp.eq.s32.totalorder %s2915_s12, 0 }
  0x66   : > { %2737 = dma.done.wait (%p3348_p7), [#allocation13], 512   ;;  %p3349_p2 = pmov %p3348_p7 }
  0x67   : > { %v2774_v0 = vmov 0   ;;  %vm539_vm0 = vcmask 261120   ;;  %v510_v1 = vld [vmem:[%s435_s13] sm:$0xff]  ;;  %v786_v2 = vld [vmem:[%s444_s14] sm:$0xff]  ;;  %v2775_v20 = vmov 0.0   ;;  %vm768_vm1 = vcmask 64512  }
  0x68   : > { %2739 = vsyncadd (%p3349_p2), [#allocation13], 4294966784  ;;  %2542 = vset.pattern.permute.xlu0 %v2774_v0  ;;  %2543 = vset.pattern.permute.xlu1 %v2774_v0  ;;  %v511_v3 = vld [vmem:[%s3305_s3] sm:$0xff]  ;;  %v512_v5 = vld [vmem:[%s3305_s3 + $0x8] sm:$0xff]  ;;  %782 = vst.msk [vmem:[#allocation5] sm:$0xff] %vm768_vm1, %v2775_v20  ;;  %vm2776_vm2 = vmmov 0  }
  0x69   : > { %2369 = vmatprep.subr.msk.mxu0 %vm539_vm0, %v510_v1  ;;  %2377 = vmatprep.subr.msk.mxu1 %vm539_vm0, %v786_v2  ;;  %v787_v4 = vld [vmem:[%s3307_s5] sm:$0xff]  ;;  %v788_v6 = vld [vmem:[%s3307_s5 + $0x8] sm:$0xff]  ;;  %v513_v7 = vld [vmem:[%s3305_s3 + $0x10] sm:$0xff]  ;;  %783 = vst.msk [vmem:[#allocation5 + $0x8] sm:$0xff] %vm768_vm1, %v2775_v20  ;;  %vm773_vm3 = vcmask 7168   ;;  %v2777_v57 = vmov -inf  }
  0x6a   : > { %2370 = vmatpush3.xpose.msk.msra.mxu0 %vm539_vm0, %v510_v1  ;;  %2378 = vmatpush3.xpose.msk.msra.mxu1 %vm539_vm0, %v786_v2  ;;  %v789_v8 = vld [vmem:[%s3307_s5 + $0x10] sm:$0xff]  ;;  %v515_v9 = vld [vmem:[%s3306_s4] sm:$0xff]  ;;  %v516_v11 = vld [vmem:[%s3306_s4 + $0x8] sm:$0xff]  ;;  %784 = vst.msk [vmem:[#allocation5 + $0x10] sm:$0xff] %vm768_vm1, %v2775_v20  ;;  %s3350_s13 = sld [smem:[#allocation20_spill]]  ;;  %s2131_s20 = scalar_lea.sflag [#allocation8], %s2997_s11 }
  0x6b   : > { %2371 = vmatprep.mubr.msk.f32.mxu0 %vm539_vm0, %v511_v3  ;;  %2379 = vmatprep.mubr.msk.f32.mxu1 %vm539_vm0, %v787_v4  ;;  %v517_v10 = vld [vmem:[%s3306_s4 + $0x10] sm:$0xff]  ;;  %v514_v12 = vld [vmem:[%s3305_s3 + $0x18] sm:$0xff]  ;;  %v791_v15 = vld [vmem:[%s3308_s6] sm:$0xff]  ;;  %785 = vst.msk [vmem:[#allocation5 + $0x18] sm:$0xff] %vm768_vm1, %v2775_v20  ;;  %s3352_s16 = sld [smem:[#allocation28_spill]]  ;;  %s2778_s21 = smov [#allocation14]  }
  0x6c   : > { %521 = vperm.xlu0 %2542, %v515_v9   ;;  %v790_v13 = vld [vmem:[%s3307_s5 + $0x18] sm:$0xff]  ;;  %531 = vperm.xlu1 %2543, %v517_v10   ;;  %v792_v16 = vld [vmem:[%s3308_s6 + $0x8] sm:$0xff]  ;;  %v793_v17 = vld [vmem:[%s3308_s6 + $0x10] sm:$0xff]  ;;  %774 = vst.msk [vmem:[#allocation3] sm:$0xff] %vm773_vm3, %v2777_v57  ;;  %s3353_s30 = sld [smem:[#allocation29_spill]]  ;;  %s2682_s15 = sshll.u32 %s2778_s21, 4  ;;  %s2683_s15 = int_to_ptr.vmem [resolvable:$false] %s2682_s15 }
  0x6d   : > { %2372 = vmatmul.mubr.msk.f32.vlgmr.msra.gmra.mxu0 %vm539_vm0, %v512_v5  ;;  %2380 = vmatmul.mubr.msk.f32.vlgmr.msra.gmra.mxu1 %vm539_vm0, %v788_v6  ;;  %v518_v14 = vld [vmem:[%s3306_s4 + $0x18] sm:$0xff]  ;;  %v916_v19 = vld [vmem:[%s453_s1] sm:$0xff]  ;;  %v919_v43 = vld [vmem:[%s3309_s7 + $0x10] sm:$0xff]  ;;  %775 = vst.msk [vmem:[#allocation3 + $0x8] sm:$0xff] %vm773_vm3, %v2777_v57  ;;  %s505_s1 = scalar_lea.vmem [#allocation14], %s3000_s27  ;;  %s2684_s27 = scalar_lea.vmem %s2683_s15, 256 }
  0x6e   : > { %2374 = vmatprep.mubr.msk.f32.mxu0 %vm539_vm0, %v513_v7  ;;  %2382 = vmatprep.mubr.msk.f32.mxu1 %vm539_vm0, %v789_v8  ;;  %v794_v18 = vld [vmem:[%s3308_s6 + $0x18] sm:$0xff]  ;;  %v917_v21 = vld [vmem:[%s3309_s7] sm:$0xff]  ;;  %v918_v22 = vld [vmem:[%s3309_s7 + $0x8] sm:$0xff]  ;;  %776 = vst.msk [vmem:[#allocation3 + $0x10] sm:$0xff] %vm773_vm3, %v2777_v57  ;;  %s2144_s23 = sshll.u32 %s505_s1, 4  ;;  %s2145_s23 = int_to_ptr.vmem [resolvable:$true] %s2144_s23 }
  0x6f   : > { %2385 = vmatprep.subr.msk.mxu0 %vm539_vm0, %v916_v19  ;;  %2393 = vmatprep.subr.mxu1 %v2775_v20  ;;  %v920_v44 = vld [vmem:[%s3309_s7 + $0x18] sm:$0xff]  ;;  %777 = vst.msk [vmem:[#allocation3 + $0x18] sm:$0xff] %vm773_vm3, %v2777_v57  ;;  %778 = vst.msk [vmem:[#allocation4] sm:$0xff] %vm773_vm3, %v2775_v20  ;;  %s2678_s24 = scalar_lea.vmem %s2145_s23, 128  ;;  %p2685_p4 = scmp.lt.s32.totalorder %s2145_s23, %s2683_s15 }
  0x70   : > { %526 = vperm.xlu0 %2542, %v516_v11   ;;  %536 = vperm.xlu1 %2543, %v518_v14   ;;  %779 = vst.msk [vmem:[#allocation4 + $0x8] sm:$0xff] %vm773_vm3, %v2775_v20  ;;  %780 = vst.msk [vmem:[#allocation4 + $0x10] sm:$0xff] %vm773_vm3, %v2775_v20  ;;  %s2327_s25 = sshll.u32 %s3350_s13, 7  ;;  %p2679_p11 = scmp.ne.s32.totalorder %s2145_s23, %s2678_s24 }
  0x71   : > { %2375 = vmatmul.mubr.msk.f32.gmra.mxu0 %vm539_vm0, %v514_v12  ;;  %2383 = vmatmul.mubr.msk.f32.gmra.mxu1 %vm539_vm0, %v790_v13  ;;  %781 = vst.msk [vmem:[#allocation4 + $0x18] sm:$0xff] %vm773_vm3, %v2775_v20  ;;  %p2686_p5 = scmp.lt.s32.totalorder %s2684_s27, %s2678_s24 }
  0x72   : > { %2386 = vmatpush3.xpose.msk.msra.mxu0 %vm539_vm0, %v916_v19  ;;  %2387 = vmatprep.mubr.msk.f32.mxu0 %vm539_vm0, %v917_v21  ;;  %s2142_s10 = scalar_lea.hbm %s3353_s30, %s2327_s25  ;;  %p2680_p3 = pnand %p2679_p11, %p2932_p12 }
  0x73   : > { %2403 = vmatprep.subr.mxu0 %v2775_v20  ;;  %2395 = vmatprep.mubr.msk.f32.mxu1 %vm2776_vm2, %v2775_v20  ;;  %v3155_v10 = vld [vmem:[#allocation3] sm:$0xff]  ;;  %p2687_p8 = por %p2686_p5, %p2685_p4 }
  0x74   : > { %797 = vperm.xlu0 %2542, %v791_v15   ;;  %802 = vperm.xlu1 %2543, %v792_v16   ;;  %v3160_v13 = vld [vmem:[#allocation3 + $0x8] sm:$0xff]  ;;  %p2681_p1 = pneg %p2680_p3 }
  0x75   : > { %2388 = vmatmul.mubr.msk.f32.vlgmr.msra.gmra.mxu0 %vm539_vm0, %v918_v22  ;;  %v921_v22 = vld [vmem:[%s3310_s8] sm:$0xff] }
  0x76   : > { %2390 = vmatprep.mubr.msk.f32.mxu0 %vm539_vm0, %v919_v43  ;;  %p2688_p6 = pnand %p2687_p8, %p2681_p1 }
  0x78   : > { %807 = vperm.xlu0 %2542, %v793_v17   ;;  %812 = vperm.xlu1 %2543, %v794_v18   ;;  %v3170_v17 = vld [vmem:[#allocation3 + $0x10] sm:$0xff]  ;;  %v3172_v18 = vld [vmem:[#allocation3 + $0x18] sm:$0xff] }
  0x79   : > { %2391 = vmatmul.mubr.msk.f32.gmra.mxu0 %vm539_vm0, %v920_v44 }
  0x7a   : > { %2405 = vmatprep.mubr.msk.f32.mxu0 %vm2776_vm2, %v2775_v20 }
  0xe7   : > { %v522_v23 = vpop.permute.xlu0 %521  ;;  %v532_v31 = vpop.permute.xlu1 %531 }
  0xeb   : > { %v527_v24 = vpop.permute.xlu0 %526  ;;  %v537_v41 = vpop.permute.xlu1 %536 }
  0xef   : > { %v798_v25 = vpop.permute.xlu0 %797  ;;  %v803_v45 = vpop.permute.xlu1 %802 }
  0xf3   : > { %v808_v36 = vpop.permute.xlu0 %807  ;;  %v813_v46 = vpop.permute.xlu1 %812 }
 0x12d   : > { %v2373_v26 = vpop.f32.mrf.mxu0  ;;  %v2381_v27 = vpop.f32.mrf.mxu1 }
 0x12e   : > { %v627_v28 = vadd.f32 %v2373_v26, %v527_v24  ;;  %v903_v50 = vadd.f32 %v2381_v27, %v803_v45 }
 0x12f   : > { %v897_v29 = vpop.f32.mrf.mxu1  ;;  %v621_v30 = vpop.f32.mrf.mxu0 }
 0x130   : > { %v898_v32 = vadd.f32 %v897_v29, %v798_v25  ;;  %v622_v33 = vadd.f32 %v621_v30, %v522_v23  ;;  %672 = vxpose.xlu1.b32.start.end [1/1] (short) (narrow) %v627_v28, 8  ;;  %v923_v28 = vld [vmem:[%s3310_s8 + $0x10] sm:$0xff]  ;;  %v922_v29 = vld [vmem:[%s3310_s8 + $0x8] sm:$0xff]  ;;  %v924_v30 = vld [vmem:[%s3310_s8 + $0x18] sm:$0xff] }
 0x131   : > { %v2376_v34 = vpop.f32.mrf.mxu0  ;;  %v2384_v35 = vpop.f32.mrf.mxu1 }
 0x132   : > { %2394 = vmatpush3.msra.mxu1 %v898_v32  ;;  %640 = vxpose.xlu0.b32.start.end [1/1] (short) (narrow) %v622_v33, 8  ;;  %v637_v42 = vadd.f32 %v2376_v34, %v537_v41  ;;  %v913_v54 = vadd.f32 %v2384_v35, %v813_v46 }
 0x133   : > { %v907_v37 = vpop.f32.mrf.mxu1  ;;  %v631_v38 = vpop.f32.mrf.mxu0  ;;  %2398 = vmatprep.subr.mxu1 %v2775_v20 }
 0x134   : > { %v908_v39 = vadd.f32 %v907_v37, %v808_v36  ;;  %v632_v40 = vadd.f32 %v631_v38, %v532_v31 }
 0x135   : > { %v3145_v58 = vpop.f32.mrf.mxu0 }
 0x136   : > { %2404 = vmatpush3.msra.mxu0 %v908_v39  ;;  %704 = vxpose.xlu0.b32.start.end [1/1] (short) (narrow) %v632_v40, 8 }
 0x137   : > { %2413 = vmatprep.subr.mxu0 %v2775_v20  ;;  %v1026_v59 = vpop.f32.mrf.mxu0 }
 0x139   : > { %v3147_v60 = vpop.f32.mrf.mxu0 }
 0x13a   : > { %736 = vxpose.xlu0.b32.start.end [1/1] (short) (narrow) %v637_v42, 8 }
 0x13b   : > { %v3149_v62 = vpop.f32.mrf.mxu0 }
 0x1ac   : > { %v688_v47 = vpop.trf.xlu1 }
 0x1ad   : > { %770 = vst.msk [vmem:[#allocation2 + $0x8] sm:$0xff] %vm768_vm1, %v688_v47 }
 0x1ae   : > { %v656_v48 = vpop.trf.xlu0 }
 0x1af   : > { %769 = vst.msk [vmem:[#allocation2] sm:$0xff] %vm768_vm1, %v656_v48 }
 0x1b2   : > { %v720_v49 = vpop.trf.xlu0 }
 0x1b3   : > { %771 = vst.msk [vmem:[#allocation2 + $0x10] sm:$0xff] %vm768_vm1, %v720_v49 }
 0x1b4   : > { %v1046_v53 = vld [vmem:[#allocation2 + $0x8] sm:$0xff] }
 0x1b6   : > { %v1045_v51 = vld [vmem:[#allocation2] sm:$0xff]  ;;  %v752_v52 = vpop.trf.xlu0 }
 0x1b7   : > { %2396 = vmatmul.mubr.msk.f32.vlgmr.msra.gmra.mxu1 %vm768_vm1, %v1045_v51  ;;  %772 = vst.msk [vmem:[#allocation2 + $0x18] sm:$0xff] %vm768_vm1, %v752_v52 }
 0x1b8   : > { %2399 = vmatpush3.msra.mxu1 %v903_v50  ;;  %2400 = vmatprep.mubr.msk.f32.mxu1 %vm2776_vm2, %v2775_v20 }
 0x1b9   : > { %2408 = vmatprep.subr.mxu1 %v2775_v20 }
 0x1ba   : > { %v1047_v55 = vld [vmem:[#allocation2 + $0x10] sm:$0xff] }
 0x1bb   : > { %2401 = vmatmul.mubr.msk.f32.vlgmr.msra.gmra.mxu1 %vm768_vm1, %v1046_v53  ;;  %2406 = vmatmul.mubr.msk.f32.vlgmr.msra.gmra.mxu0 %vm768_vm1, %v1047_v55 }
 0x1bc   : > { %2409 = vmatpush3.msra.mxu1 %v913_v54  ;;  %2410 = vmatprep.mubr.msk.f32.mxu1 %vm2776_vm2, %v2775_v20 }
 0x1bd   : > { %2415 = vmatprep.mubr.msk.f32.mxu0 %vm2776_vm2, %v2775_v20  ;;  %2418 = vmatprep.subr.mxu1 %v2775_v20 }
 0x1be   : > { %v1048_v56 = vld [vmem:[#allocation2 + $0x18] sm:$0xff] }
 0x1bf   : > { %2411 = vmatmul.mubr.msk.f32.vlgmr.msra.gmra.mxu1 %vm768_vm1, %v1048_v56 }
 0x1c0   : > { %2420 = vmatprep.mubr.msk.f32.mxu1 %vm2776_vm2, %v2775_v20 }
 0x277   : > { %v1119_v61 = vpop.f32.mrf.mxu1 }
 0x278   : > { %v1346_v63 = vsel %vm768_vm1, %v1119_v61, -inf }
 0x279   : > { %1347 = vmax.xlane.f32.xlu0 %v1346_v63  ;;  %v2397_v0 = vpop.f32.mrf.mxu1 }
 0x27b   : > { %v1192_v1 = vpop.f32.mrf.mxu1  ;;  %v1265_v2 = vpop.f32.mrf.mxu0 }
 0x27c   : > { %v1349_v3 = vsel %vm768_vm1, %v1192_v1, -inf  ;;  %v1352_v6 = vsel %vm768_vm1, %v1265_v2, -inf }
 0x27d   : > { %1350 = vmax.xlane.f32.xlu1 %v1349_v3  ;;  %v2402_v4 = vpop.f32.mrf.mxu1  ;;  %v2407_v5 = vpop.f32.mrf.mxu0  ;;  %v1406_v3 = vld [vmem:[#allocation4] sm:$0xff] }
 0x27f   : > { %v1338_v7 = vpop.f32.mrf.mxu1 }
 0x280   : > { %v1355_v8 = vsel %vm768_vm1, %v1338_v7, -inf }
 0x281   : > { %1353 = vmax.xlane.f32.xlu1 %v1352_v6  ;;  %v2412_v9 = vpop.f32.mrf.mxu1  ;;  %1356 = vmax.xlane.f32.xlu0 %v1355_v8  ;;  %v1407_v6 = vld [vmem:[#allocation4 + $0x8] sm:$0xff] }
 0x302   : > { %v1348_v11 = vpop.xlane.xlu0 %1347 }
 0x303   : > { %v3158_v12 = vmax.f32 %v3155_v10, %v1348_v11 }
 0x305   : > { %v1362_v14 = vsub.f32 %v3155_v10, %v3158_v12  ;;  %1775 = vst.msk [vmem:[#allocation3] sm:$0xff] %vm773_vm3, %v3158_v12  ;;  %1376 = vperm.xlu1 %2543, %v3158_v12   ;;  %v1408_v10 = vld [vmem:[#allocation4 + $0x10] sm:$0xff] }
 0x306   : > { %v1351_v15 = vpop.xlane.xlu1 %1350 }
 0x307   : > { %v3168_v16 = vmax.f32 %v3160_v13, %v1351_v15  ;;  %v1366_v54 = vmul.f32 1.442695, %v1362_v14  ;;  %v1409_v14 = vld [vmem:[#allocation4 + $0x18] sm:$0xff] }
 0x309   : > { %v1363_v19 = vsub.f32 %v3160_v13, %v3168_v16  ;;  %1776 = vst.msk [vmem:[#allocation3 + $0x8] sm:$0xff] %vm773_vm3, %v3168_v16  ;;  %1381 = vperm.xlu0 %2542, %v3168_v16  }
 0x30a   : > { %v1354_v21 = vpop.xlane.xlu1 %1353  ;;  %v1357_v23 = vpop.xlane.xlu0 %1356 }
 0x30b   : > { %v1360_v24 = vmax.f32 %v3170_v17, %v1354_v21  ;;  %v3184_v25 = vmax.f32 %v3172_v18, %v1357_v23  ;;  %v1818_v23 = vld [vmem:[#allocation12] sm:$0xff] }
 0x30d   : > { %v1364_v26 = vsub.f32 %v3170_v17, %v1360_v24  ;;  %1777 = vst.msk [vmem:[#allocation3 + $0x10] sm:$0xff] %vm773_vm3, %v1360_v24  ;;  %927 = vperm.xlu0 %2542, %v921_v22   ;;  %1386 = vperm.xlu1 %2543, %v1360_v24   ;;  %v1365_v27 = vsub.f32 %v3172_v18, %v3184_v25  ;;  %1778 = vst.msk [vmem:[#allocation3 + $0x18] sm:$0xff] %vm773_vm3, %v3184_v25 }
 0x30f   : > { %v1370_v57 = vmul.f32 1.442695, %v1364_v26  ;;  %v1819_v26 = vld [vmem:[#allocation12 + $0x8] sm:$0xff] }
 0x311   : > { %937 = vperm.xlu0 %2542, %v923_v28   ;;  %1391 = vperm.xlu1 %2543, %v3184_v25  }
 0x315   : > { %932 = vperm.xlu1 %2543, %v922_v29  }
 0x319   : > { %942 = vperm.xlu1 %2543, %v924_v30   ;;  %v1739_v30 = vld [vmem:[#allocation5] sm:$0xff] }
 0x380   : > { %v1377_v31 = vpop.permute.xlu1 %1376 }
 0x381   : > { %v1394_v32 = vsub.f32 %v1119_v61, %v1377_v31 }
 0x383   : > { %v1398_v33 = vmul.f32 1.442695, %v1394_v32 }
 0x384   : > { %v1382_v34 = vpop.permute.xlu0 %1381 }
 0x385   : > { %2544 = vpow2.f32 %v1398_v33  ;;  %v1395_v35 = vsub.f32 %v1192_v1, %v1382_v34  ;;  %v1740_v33 = vld [vmem:[#allocation5 + $0x8] sm:$0xff] }
 0x387   : > { %v1400_v36 = vmul.f32 1.442695, %v1395_v35 }
 0x388   : > { %v1387_v37 = vpop.permute.xlu1 %1386  ;;  %v928_v38 = vpop.permute.xlu0 %927 }
 0x389   : > { %2546 = vpow2.f32 %v1400_v36  ;;  %v1396_v39 = vsub.f32 %v1265_v2, %v1387_v37  ;;  %v1027_v40 = vadd.f32 %v1026_v59, %v928_v38 }
 0x38b   : > { %v1402_v41 = vmul.f32 1.442695, %v1396_v39  ;;  %2414 = vmatpush3.xpose.msk.msra.mxu0 %vm768_vm1, %v1027_v40  ;;  %v1741_v40 = vld [vmem:[#allocation5 + $0x10] sm:$0xff] }
 0x38c   : > { %v1392_v42 = vpop.permute.xlu1 %1391  ;;  %2423 = vmatprep.subr.mxu0 %v2775_v20  ;;  %v938_v45 = vpop.permute.xlu0 %937 }
 0x38d   : > { %2548 = vpow2.f32 %v1402_v41  ;;  %v1397_v43 = vsub.f32 %v1338_v7, %v1392_v42  ;;  %v1037_v49 = vadd.f32 %v3149_v62, %v938_v45  ;;  %v1368_v62 = vmul.f32 1.442695, %v1363_v19  ;;  %v1742_v45 = vld [vmem:[#allocation5 + $0x18] sm:$0xff] }
 0x38f   : > { %v1404_v44 = vmul.f32 1.442695, %v1397_v43 }
 0x390   : > { %v933_v46 = vpop.permute.xlu1 %932 }
 0x391   : > { %2550 = vpow2.f32 %v1404_v44  ;;  %v1032_v47 = vadd.f32 %v3145_v58, %v933_v46 }
 0x392   : > { %v2545_v48 = vpop.eup %2544  ;;  %2552 = vpow2.f32 %v1366_v54 }
 0x393   : > { %2416 = vmatmul.mubr.msk.f32.vlgmr.msra.gmra.mxu0 %vm768_vm1, %v2545_v48  ;;  %2419 = vmatpush3.xpose.msk.msra.mxu1 %vm768_vm1, %v1032_v47  ;;  %v1414_v50 = vsel %vm768_vm1, %v2545_v48, 0.0  ;;  %2554 = vpow2.f32 %v1370_v57  ;;  %v1820_v57 = vld [vmem:[#allocation12 + $0x10] sm:$0xff] }
 0x394   : > { %2424 = vmatpush3.xpose.msk.msra.mxu0 %vm768_vm1, %v1037_v49  ;;  %1415 = vadd.xlane.f32.xlu0 %v1414_v50  ;;  %v943_v51 = vpop.permute.xlu1 %942 }
 0x395   : > { %v1042_v52 = vadd.f32 %v3147_v60, %v943_v51  ;;  %2428 = vmatprep.subr.mxu1 %v2775_v20  ;;  %2425 = vmatprep.mubr.msk.f32.mxu0 %vm2776_vm2, %v2775_v20  ;;  %v1372_v60 = vmul.f32 1.442695, %v1365_v27 }
 0x396   : > { %v2547_v53 = vpop.eup %2546  ;;  %2433 = vmatprep.subr.mxu0 %v2775_v20 }
 0x397   : > { %2421 = vmatmul.mubr.msk.f32.vlgmr.msra.gmra.mxu1 %vm768_vm1, %v2547_v53  ;;  %v1417_v55 = vsel %vm768_vm1, %v2547_v53, 0.0  ;;  %2556 = vpow2.f32 %v1372_v60 }
 0x398   : > { %2429 = vmatpush3.xpose.msk.msra.mxu1 %vm768_vm1, %v1042_v52  ;;  %1418 = vadd.xlane.f32.xlu1 %v1417_v55  ;;  %2558 = vpow2.f32 %v1368_v62 }
 0x399   : > { %2430 = vmatprep.mubr.msk.f32.mxu1 %vm2776_vm2, %v2775_v20  ;;  %2438 = vmatprep.subr.mxu1 %v2775_v20 }
 0x39a   : > { %v2549_v56 = vpop.eup %2548 }
 0x39b   : > { %2426 = vmatmul.mubr.msk.f32.vlgmr.msra.gmra.mxu0 %vm768_vm1, %v2549_v56  ;;  %v1420_v58 = vsel %vm768_vm1, %v2549_v56, 0.0 }
 0x39c   : > { %1421 = vadd.xlane.f32.xlu0 %v1420_v58  ;;  %2435 = vmatprep.mubr.msk.f32.mxu0 %vm2776_vm2, %v2775_v20 }
 0x39d   : > { %2434 = vmatpush3.msra.mxu0 %v1818_v23 }
 0x39e   : > { %v2551_v59 = vpop.eup %2550  ;;  %2443 = vmatprep.subr.mxu0 %v2775_v20 }
 0x39f   : > { %2431 = vmatmul.mubr.msk.f32.vlgmr.msra.gmra.mxu1 %vm768_vm1, %v2551_v59  ;;  %v1423_v61 = vsel %vm768_vm1, %v2551_v59, 0.0  ;;  %v2553_v63 = vpop.eup %2552 }
 0x3a0   : > { %1424 = vadd.xlane.f32.xlu0 %v1423_v61  ;;  %2440 = vmatprep.mubr.msk.f32.mxu1 %vm2776_vm2, %v2775_v20  ;;  %v2555_v0 = vpop.eup %2554  ;;  %v1410_v4 = vmul.f32 %v2553_v63, %v1406_v3  ;;  %v1821_v61 = vld [vmem:[#allocation12 + $0x18] sm:$0xff] }
 0x3a1   : > { %v1412_v12 = vmul.f32 %v2555_v0, %v1408_v10  ;;  %2439 = vmatpush3.msra.mxu1 %v1819_v26 }
 0x3a2   : > { %2448 = vmatprep.subr.mxu1 %v2775_v20 }
 0x3a4   : > { %v2557_v1 = vpop.eup %2556 }
 0x3a5   : > { %v2559_v2 = vpop.eup %2558  ;;  %v1413_v17 = vmul.f32 %v2557_v1, %v1409_v14 }
 0x3a6   : > { %v1411_v8 = vmul.f32 %v2559_v2, %v1407_v6 }
 0x3a9   : > { %1745 = vperm.xlu1 %2543, %v2553_v63  }
 0x3ad   : > { %1755 = vperm.xlu1 %2543, %v2555_v0  }
 0x3b1   : > { %1760 = vperm.xlu1 %2543, %v2557_v1  }
 0x3b6   : > { %1750 = vperm.xlu0 %2542, %v2559_v2  }
 0x41d   : > { %v1416_v5 = vpop.xlane.xlu0 %1415 }
 0x41e   : > { %v1426_v7 = vadd.f32 %v1416_v5, %v1410_v4 }
 0x420   : > { %1431 = vst.msk [vmem:[#allocation4] sm:$0xff] %vm773_vm3, %v1426_v7 }
 0x421   : > { %v1419_v9 = vpop.xlane.xlu1 %1418 }
 0x422   : > { %v1427_v11 = vadd.f32 %v1419_v9, %v1411_v8 }
 0x424   : > { %1432 = vst.msk [vmem:[#allocation4 + $0x8] sm:$0xff] %vm773_vm3, %v1427_v11 }
 0x425   : > { %v1422_v13 = vpop.xlane.xlu0 %1421  ;;  %v1746_v31 = vpop.permute.xlu1 %1745 }
 0x426   : > { %v1428_v15 = vadd.f32 %v1422_v13, %v1412_v12  ;;  %v1763_v32 = vmul.f32 %v1746_v31, %v1739_v30 }
 0x427   : > { %v1782_v16 = vld [vmem:[#allocation4] sm:$0xff] }
 0x428   : > { %1433 = vst.msk [vmem:[#allocation4 + $0x10] sm:$0xff] %vm773_vm3, %v1428_v15  ;;  %2560 = vrcp.f32 %v1782_v16  ;;  %v2325_v16 = vld [vmem:[%s3352_s16] ss:$0 sm:$0xff] }
 0x429   : > { %v1425_v18 = vpop.xlane.xlu0 %1424  ;;  %v1756_v37 = vpop.permute.xlu1 %1755 }
 0x42a   : > { %v1429_v19 = vadd.f32 %v1425_v18, %v1413_v17  ;;  %v1765_v44 = vmul.f32 %v1756_v37, %v1741_v40 }
 0x42b   : > { %v1783_v21 = vld [vmem:[#allocation4 + $0x8] sm:$0xff] }
 0x42c   : > { %1434 = vst.msk [vmem:[#allocation4 + $0x18] sm:$0xff] %vm773_vm3, %v1429_v19  ;;  %2562 = vrcp.f32 %v1783_v21 }
 0x42d   : > { %v1761_v46 = vpop.permute.xlu1 %1760 }
 0x42e   : > { %v1766_v50 = vmul.f32 %v1761_v46, %v1742_v45 }
 0x42f   : > { %v1784_v22 = vld [vmem:[#allocation4 + $0x10] sm:$0xff] }
 0x430   : > { %2564 = vrcp.f32 %v1784_v22 }
 0x431   : > { %v1751_v34 = vpop.permute.xlu0 %1750 }
 0x432   : > { %v1764_v39 = vmul.f32 %v1751_v34, %v1740_v33 }
 0x433   : > { %v1785_v24 = vld [vmem:[#allocation4 + $0x18] sm:$0xff] }
 0x434   : > { %2566 = vrcp.f32 %v1785_v24 }
 0x435   : > { %v2561_v25 = vpop.eup %2560 }
 0x436   : > { %1796 = vperm.xlu0 %2542, %v2561_v25  }
 0x439   : > { %v2563_v27 = vpop.eup %2562 }
 0x43a   : > { %1801 = vperm.xlu1 %2543, %v2563_v27  }
 0x43d   : > { %v2565_v28 = vpop.eup %2564 }
 0x43e   : > { %1806 = vperm.xlu0 %2542, %v2565_v28  }
 0x441   : > { %v2567_v29 = vpop.eup %2566 }
 0x442   : > { %1811 = vperm.xlu1 %2543, %v2567_v29  }
 0x453   : > { %v1507_v35 = vpop.f32.mrf.mxu0 }
 0x454   : > { %v1767_v36 = vadd.f32 %v1763_v32, %v1507_v35 }
 0x455   : > { %v2417_v38 = vpop.f32.mrf.mxu0 }
 0x456   : > { %1771 = vst.msk [vmem:[#allocation5] sm:$0xff] %vm768_vm1, %v1767_v36 }
 0x457   : > { %v1583_v41 = vpop.f32.mrf.mxu1 }
 0x458   : > { %v1768_v42 = vadd.f32 %v1764_v39, %v1583_v41 }
 0x459   : > { %v2422_v43 = vpop.f32.mrf.mxu1 }
 0x45a   : > { %1772 = vst.msk [vmem:[#allocation5 + $0x8] sm:$0xff] %vm768_vm1, %v1768_v42 }
 0x45b   : > { %v1659_v47 = vpop.f32.mrf.mxu0 }
 0x45c   : > { %v1769_v48 = vadd.f32 %v1765_v44, %v1659_v47 }
 0x45d   : > { %v2427_v49 = vpop.f32.mrf.mxu0  ;;  %v1790_v54 = vld [vmem:[#allocation5] sm:$0xff] }
 0x45e   : > { %1773 = vst.msk [vmem:[#allocation5 + $0x10] sm:$0xff] %vm768_vm1, %v1769_v48 }
 0x45f   : > { %v1735_v51 = vpop.f32.mrf.mxu1 }
 0x460   : > { %v1770_v52 = vadd.f32 %v1766_v50, %v1735_v51 }
 0x461   : > { %v2432_v53 = vpop.f32.mrf.mxu1  ;;  %v1791_v59 = vld [vmem:[#allocation5 + $0x8] sm:$0xff] }
 0x462   : > { %1774 = vst.msk [vmem:[#allocation5 + $0x18] sm:$0xff] %vm768_vm1, %v1770_v52 }
 0x465   : > { %v1792_v62 = vld [vmem:[#allocation5 + $0x10] sm:$0xff] }
 0x469   : > { %v1793_v1 = vld [vmem:[#allocation5 + $0x18] sm:$0xff] }
 0x4b1   : > { %v1797_v55 = vpop.permute.xlu0 %1796 }
 0x4b2   : > { %v1814_v56 = vmul.f32 %v1797_v55, %v1790_v54 }
 0x4b4   : > { %2436 = vmatmul.mubr.msk.f32.vlgmr.msra.gmra.mxu0 %vm768_vm1, %v1814_v56 }
 0x4b5   : > { %v1802_v58 = vpop.permute.xlu1 %1801  ;;  %2444 = vmatpush3.msra.mxu0 %v1820_v57  ;;  %2445 = vmatprep.mubr.msk.f32.mxu0 %vm2776_vm2, %v2775_v20 }
 0x4b6   : > { %v1815_v60 = vmul.f32 %v1802_v58, %v1791_v59 }
 0x4b8   : > { %2441 = vmatmul.mubr.msk.f32.vlgmr.msra.gmra.mxu1 %vm768_vm1, %v1815_v60 }
 0x4b9   : > { %v1807_v63 = vpop.permute.xlu0 %1806  ;;  %2449 = vmatpush3.msra.mxu1 %v1821_v61  ;;  %2450 = vmatprep.mubr.msk.f32.mxu1 %vm2776_vm2, %v2775_v20 }
 0x4ba   : > { %v1816_v0 = vmul.f32 %v1807_v63, %v1792_v62 }
 0x4bc   : > { %2446 = vmatmul.mubr.msk.f32.vlgmr.msra.gmra.mxu0 %vm768_vm1, %v1816_v0 }
 0x4bd   : > { %v1812_v2 = vpop.permute.xlu1 %1811 }
 0x4be   : > { %v1817_v3 = vmul.f32 %v1812_v2, %v1793_v1 }
 0x4c0   : > { %2451 = vmatmul.mubr.msk.f32.vlgmr.msra.gmra.mxu1 %vm768_vm1, %v1817_v3 }
 0x574   : > { %v1891_v4 = vpop.f32.mrf.mxu0 }
 0x575   : > { %v2114_v10 = vsel %vm539_vm0, %v1891_v4, 0.0 }
 0x576   : > { %v2437_v5 = vpop.f32.mrf.mxu0 }
 0x578   : > { %v1964_v6 = vpop.f32.mrf.mxu1 }
 0x579   : > { %v2115_v8 = vsel %vm539_vm0, %v1964_v6, 0.0 }
 0x57a   : > { %v2442_v7 = vpop.f32.mrf.mxu1  ;;  %v2116_v11 = vadd.f32 %v2115_v8, %v2114_v10 }
 0x57c   : > { %v2037_v9 = vpop.f32.mrf.mxu0 }
 0x57d   : > { %v2117_v20 = vsel %vm539_vm0, %v2037_v9, 0.0 }
 0x57e   : > { %v2447_v12 = vpop.f32.mrf.mxu0  ;;  %v2118_v13 = vadd.f32 %v2117_v20, %v2116_v11 }
 0x580   : > { %v2110_v14 = vpop.f32.mrf.mxu1 }
 0x581   : > { %v2119_v15 = vsel %vm539_vm0, %v2110_v14, 0.0 }
 0x582   : > { %v2120_v17 = vadd.f32 %v2119_v15, %v2118_v13  ;;  %v2452_v18 = vpop.f32.mrf.mxu1 }
 0x584   : > { %v2128_v19 = vadd.f32 %v2325_v16, %v2120_v17 }
 0x586   : > { %2129 = vst.msk [vmem:[%s505_s1] sm:$0xff] %vm539_vm0, %v2128_v19 }
 0x587   : > { %2691 = shalt.err (!%p2688_p6)
}
 0x588   : > { %s2692_s17 = scalar_lea.hbm %s2142_s10, 128  ;;  %s2696_s13 = scalar_lea.hbm %s3353_s30, 256 }
 0x589   : > { %p2693_p9 = scmp.ne.s32.totalorder %s2142_s10, %s2692_s17  ;;  %p2697_p7 = scmp.lt.s32.totalorder %s2142_s10, %s3353_s30 }
 0x58a   : > { %p2698_p2 = scmp.lt.s32.totalorder %s2696_s13, %s2692_s17 }
 0x58b   : > { %p2694_p10 = pnand %p2693_p9, %p2932_p12 }
 0x58c   : > { %p2699_p11 = por %p2698_p2, %p2697_p7 }
 0x58d   : > { %p2695_p0 = pneg %p2694_p10 }
 0x58f   : > { %p2700_p3 = pnand %p2699_p11, %p2695_p0 }
 0x591   : > { %2703 = shalt.err (!%p2700_p3)
}
 0x592   : > { %2463 = dma.vmem_to_hbm [thread:$0]  (%p2932_p12), %s2145_s23, 128, %s2142_s10, %s2131_s20  }
 0x593 PF: > { %s3354_s16 = sld [smem:[#allocation19_spill]] }
 0x594   : > { %s3356_s1 = sld [smem:[#allocation22_spill]] }
 0x599   : > { %s2156_s22 = sand.u32 1, %s3354_s16  }
 0x59a   : > { %p3357_p1 = scmp.ge.s32.totalorder %s3356_s1, 2  ;;  %s2157_s12 = scalar_lea.sflag [#allocation8], %s2156_s22 }
 0x59c   : > { %p2480_p4 = pnand %p3357_p1, %p2936_p13 }
 0x59e   : > { %p2481_p5 = pneg %p2480_p4 }
 0x5a0   : > { %2741 = dma.done.wait (%p2481_p5), %s2157_s12, 128  }
 0x5a1   : > { %2743 = vsyncadd (%p2481_p5), %s2157_s12, 4294967168  ;;  %s31_s22 = sadd.s32 1, %s3356_s1   ;;  %s3358_s24 = sld [smem:[#allocation24_spill]] }
 0x5a2   : > { %p28_p8 = scmp.ge.s32.totalorder %s31_s22, 4   ;;  %s3359_s20 = sld [smem:[#allocation21_spill]] }
 0x5a3   : > { %s3360_s21 = sld [smem:[#allocation23_spill]]  ;;  %s3361_s17 = smov %s2750_s18 }
 0x5a4   : > { %s3362_s18 = smov %s2754_s19  ;;  %30 = sbr.rel (!%p28_p8) target bundleno = 13 (0xd), region = 145 }
 0x5a7   : > { %s3363_s19 = smov %s3358_s24 }
 0x5a9   :  { %2162 = vsyncpa [#allocation7], 1 }
 0x5aa   :  { %2164 = vsyncpa [#allocation7 + $0x1], 1 }
 0x5ab   :  { %2165 = vsyncpa [#allocation10], 1 }
 0x5ac   :  { %2167 = vsyncpa [#allocation10 + $0x1], 1 }
 0x5ad   :  { %2168 = vsyncpa [#allocation13], 1 }
 0x5ae   :  { %2169 = vsyncpa [#allocation8], 1 }
 0x5af   :  { %2171 = vsyncpa [#allocation8 + $0x1], 1 }

</bundles_post_ra>
